<compile_context>
chip_gen: v6e
topology: v6e:2x2x1
jax: 0.10.0
libtpu: 0.0.40
codegen_flags: <defaults>
</compile_context>

<pallas_src>
import functools
import random

import jax
import jax.numpy as jnp
from jax.experimental import pallas as pl
from jax.experimental.pallas import tpu as pltpu

F32 = jnp.float32
MM_DTYPE = jnp.bfloat16   # dot-operand dtype (accumulation stays f32 in-kernel)
_ROW_TILE = 256           # row tile for the GIN layer kernel when N is large
_LANE = 128


def _round_up(x, m):
    return ((x + m - 1) // m) * m


def _vmem_spec():
    return pl.BlockSpec(memory_space=pltpu.MemorySpace.VMEM)


# ----------------------------------------------------------------------------
# Pallas kernels
# ----------------------------------------------------------------------------
def _gin_layer_kernel(a_ref, xfull_ref, xtile_ref, w_ref, b_ref, o_ref, *,
                      mm_dtype):
    """o = swish((x_tile + A_tile @ x_full) @ W + b), fused in one kernel."""
    a = a_ref[...].astype(mm_dtype)
    neigh = jnp.dot(a, xfull_ref[...].astype(mm_dtype),
                    preferred_element_type=jnp.float32)
    agg = (xtile_ref[...].astype(jnp.float32) + neigh).astype(mm_dtype)
    z = jnp.dot(agg, w_ref[...].astype(mm_dtype),
                preferred_element_type=jnp.float32) + b_ref[...]
    o_ref[...] = (z * jax.nn.sigmoid(z)).astype(o_ref.dtype)


def gin_layer(A, x, W, b):
    """One fused GIN layer.  A:(N,N) f32, x:(N,Din) f32, W:(Din,Dout) f32
    (Dout lane-padded), b:(1,Dout) f32  ->  (N,Dout) f32."""
    N, Din = x.shape
    Dout = W.shape[1]
    tm = N if N <= _ROW_TILE else _ROW_TILE
    grid_m = pl.cdiv(N, tm)
    # TODO(synk): for very large graphs the full x / dense A no longer fit in
    # VMEM; switch to a CSR / edge-index gather-based neighbor sum.
    grid_spec = pltpu.PrefetchScalarGridSpec(
        num_scalar_prefetch=0,
        grid=(grid_m,),
        in_specs=[
            pl.BlockSpec((tm, N), lambda i: (i, 0)),     # A row tile
            pl.BlockSpec((N, Din), lambda i: (0, 0)),    # x (full, resident)
            pl.BlockSpec((tm, Din), lambda i: (i, 0)),   # x row tile (residual)
            pl.BlockSpec((Din, Dout), lambda i: (0, 0)),  # W
            pl.BlockSpec((1, Dout), lambda i: (0, 0)),    # b
        ],
        out_specs=pl.BlockSpec((tm, Dout), lambda i: (i, 0)),
    )
    return pl.pallas_call(
        functools.partial(_gin_layer_kernel, mm_dtype=MM_DTYPE),
        out_shape=jax.ShapeDtypeStruct((N, Dout), F32),
        grid_spec=grid_spec,
        compiler_params=pltpu.CompilerParams(
            dimension_semantics=("parallel",),
            vmem_limit_bytes=32 * 1024 * 1024),
    )(A, x, x, W, b)


def _linsel_kernel(sel_ref, x_ref, w_ref, b_ref, o_ref, *, mm_dtype):
    """o = SEL @ (x @ W + b)  — merged linear1|linear3 + selection readout."""
    lin = jnp.dot(x_ref[...].astype(mm_dtype), w_ref[...].astype(mm_dtype),
                  preferred_element_type=jnp.float32) + b_ref[...]
    o_ref[...] = jnp.dot(sel_ref[...].astype(mm_dtype), lin.astype(mm_dtype),
                         preferred_element_type=jnp.float32).astype(o_ref.dtype)


def pallas_linsel(sel, x, W, b):
    M = sel.shape[0]
    Dout = W.shape[1]
    return pl.pallas_call(
        functools.partial(_linsel_kernel, mm_dtype=MM_DTYPE),
        out_shape=jax.ShapeDtypeStruct((M, Dout), F32),
        in_specs=[_vmem_spec()] * 4,
        out_specs=_vmem_spec(),
    )(sel, x, W, b)


# ----------------------------------------------------------------------------
# Parameter init (deterministic, mimics torch.nn.Linear default init),
# with lane-padding of the internal feature width done ONCE here.
# ----------------------------------------------------------------------------
def linear_init(key, fan_in, fan_out):
    kw, kb = jax.random.split(key)
    bound = 1.0 / (fan_in ** 0.5)
    W = jax.random.uniform(kw, (fan_in, fan_out), F32, -bound, bound)
    b = jax.random.uniform(kb, (fan_out,), F32, -bound, bound)
    return W, b


def pad_linear(W, b, in_pad=None, out_pad=None):
    fi, fo = W.shape
    ip = in_pad if in_pad is not None else fi
    op = out_pad if out_pad is not None else fo
    Wp = jnp.zeros((ip, op), F32).at[:fi, :fo].set(W)
    bp = jnp.zeros((1, op), F32).at[0, :fo].set(b)
    return Wp, bp


def gin_init(key, in_dim, out_dim, nlayer, in_pad, out_pad):
    # TODO(synk): GIN source not provided; synthesized as nlayer layers of
    # h <- swish(((1+eps)*h + sum_neighbors h) @ W + b) with eps = 0.
    layers = []
    if nlayer <= 0:
        return layers
    keys = jax.random.split(key, nlayer)
    d_in, p_in = in_dim, in_pad
    for l in range(nlayer):
        W, b = linear_init(keys[l], d_in, out_dim)
        layers.append(pad_linear(W, b, p_in, out_pad))
        d_in, p_in = out_dim, out_pad
    return layers


def init_learnsc_params(key, input_size, model_size, nlayer=1):
    d_pad = _round_up(max(model_size, 1), _LANE)
    d_pad13 = _round_up(2 * model_size, _LANE)
    ks = jax.random.split(key, 11)
    p = {"model_size": model_size, "d_pad": d_pad}
    p["graph_gnn"] = gin_init(ks[0], input_size, model_size, nlayer,
                              input_size, d_pad)
    p["query_gnn1"] = gin_init(ks[1], input_size, model_size, 1,
                               input_size, d_pad)
    p["query_gnn2"] = gin_init(ks[2], model_size, model_size, nlayer - 1,
                               d_pad, d_pad)
    W1, b1 = linear_init(ks[3], model_size, model_size)
    W2, b2 = linear_init(ks[4], model_size, model_size)
    W3, b3 = linear_init(ks[5], model_size, model_size)
    # merged [linear1 | linear3] acting on lane-padded hq
    Wc = jnp.zeros((d_pad, d_pad13), F32)
    Wc = Wc.at[:model_size, :model_size].set(W1)
    Wc = Wc.at[:model_size, model_size:2 * model_size].set(W3)
    bc = jnp.zeros((1, d_pad13), F32)
    bc = bc.at[0, :model_size].set(b1)
    bc = bc.at[0, model_size:2 * model_size].set(b3)
    p["linear13"] = (Wc, bc)
    p["linear2"] = (W2, b2)                      # tiny tail -> plain jnp
    p["interactor"] = gin_init(ks[6], model_size, model_size, 1, d_pad, d_pad)
    p["aggregate"] = gin_init(ks[7], 2 * model_size, model_size, 1,
                              2 * model_size, d_pad)
    p["aggregate2"] = linear_init(ks[8], 2 * model_size, model_size)
    p["weighter"] = linear_init(ks[9], 2 * model_size, 1)
    p["weighter2"] = linear_init(ks[10], model_size + 1, 1)
    return p


# ----------------------------------------------------------------------------
# GIN forward (dense adjacency; each layer = one fused Pallas kernel)
# ----------------------------------------------------------------------------
def dense_adj(edge_index, n):
    A = jnp.zeros((n, n), F32)
    if edge_index.shape[1] == 0:
        return A
    src, dst = edge_index[0], edge_index[1]
    return A.at[dst, src].add(1.0)


def gin_forward(layers, x, edge_index):
    h = x.astype(F32)
    if not layers:
        return h  # 0-layer GIN (query_gnn2 when nlayer == 1) acts as identity
    A = dense_adj(edge_index, h.shape[0])
    for (W, b) in layers:
        h = gin_layer(A, h, W, b)
    return h


def jnp_swish(x):
    return x * jax.nn.sigmoid(x)


def nonlinear_func(x, max_card, min_card):
    # TODO(synk): original `nonlinear_func` source not provided; using a
    # sigmoid squashing of the logit onto [min_card, max_card].
    return min_card + (max_card - min_card) * jax.nn.sigmoid(x)


# ----------------------------------------------------------------------------
# LearnSC.forward  (args.test_plane = False, args.no_interaction = False)
# ----------------------------------------------------------------------------
def learnsc_forward(params, xg, eg, n_orig_gnode, match, xq, eq, n_orig_qnode,
                    overlap, subqueries, itedge, npairs,
                    max_card=20.0, min_card=0.0):
    D = params["model_size"]
    Ng, Nq = xg.shape[0], xq.shape[0]

    hg = gin_forward(params["graph_gnn"], xg, eg)       # (Ng, D_pad)
    hq = gin_forward(params["query_gnn1"], xq, eq)      # (Nq, D_pad)

    # transg/transq selection matmuls are just row slices
    orig_hg = hg[:n_orig_gnode]
    orig_hq = hq[:n_orig_qnode]
    itgraph = jnp.concatenate([orig_hq, orig_hg], axis=0)

    # TODO(synk): original uses unseeded random.shuffle; made deterministic.
    E_it = itedge.shape[1]
    lst = list(range(E_it))
    random.Random(0).shuffle(lst)
    keep = jnp.asarray(lst[:5 * n_orig_qnode], jnp.int32)
    itedge = itedge[:, keep]

    itgraph = gin_forward(params["interactor"], itgraph, itedge)   # (n_it, D_pad)

    if npairs:
        npair = jnp.asarray(npairs, jnp.int32).T
    else:
        npair = jnp.zeros((2, 0), jnp.int32)
    # one-hot selection matmuls replaced with row gathers (pure data movement)
    idx1 = jnp.concatenate([itedge[0], npair[0]])
    idx2 = jnp.concatenate([itedge[1], npair[1]])
    x1s = jnp.take(itgraph, idx1, axis=0)[:, :D]
    x2s = jnp.take(itgraph, idx2, axis=0)[:, :D]
    ys = jnp.concatenate([jnp.ones((itedge.shape[1],), F32),
                          -jnp.ones((npair.shape[1],), F32)])

    # write interaction embeddings back into the original node rows
    hg = jnp.concatenate([itgraph[n_orig_qnode:], hg[n_orig_gnode:]], axis=0)
    hq = jnp.concatenate([itgraph[:n_orig_qnode], hq[n_orig_qnode:]], axis=0)

    # zero-out matched query nodes (values tensor is all-zero -> no-op add)
    mask = jnp.ones((Nq, 1), F32)
    matched = sorted(set(match.values()))
    if matched:
        mask = mask.at[jnp.asarray(matched, jnp.int32), 0].set(0.0)
    hq = hq * mask

    # residual + swish left to XLA (a dedicated kernel here is pure overhead)
    hq = jnp_swish(hq + gin_forward(params["query_gnn2"], hq, eq))

    # per-subquery mean readout + overlap mean readout via ONE fused
    # (linear1|linear3) + selection kernel
    n_sub = len(subqueries)
    S = jnp.zeros((n_sub, Nq), F32)
    for i, sq in enumerate(subqueries):
        S = S.at[i, jnp.asarray(sq, jnp.int32)].add(1.0 / len(sq))
    overlap_count = jnp.ones((n_sub, 1), F32)
    O = jnp.zeros((n_sub, Nq), F32)
    skeleton_edges = []
    for (i, j) in overlap:
        if i > j:
            continue
        skeleton_edges.append((i, j))
        idx = jnp.asarray(overlap[(i, j)], jnp.int32)
        inv = 1.0 / len(overlap[(i, j)])
        O = O.at[i, idx].add(inv)
        O = O.at[j, idx].add(inv)
        overlap_count = overlap_count.at[i, 0].add(1.0)
        overlap_count = overlap_count.at[j, 0].add(1.0)

    Wc, bc = params["linear13"]
    sel = jnp.concatenate([S, O], axis=0)               # (2*n_sub, Nq)
    sel_out = pallas_linsel(sel, hq, Wc, bc)            # (2*n_sub, D_pad13)
    readout_q = sel_out[:n_sub, :D]                     # S @ linear1(hq)
    overlap_feature = sel_out[n_sub:, D:2 * D] / overlap_count  # O @ linear3(hq)

    # readout_g: mean commutes with the affine linear2 -> tiny, plain jnp
    W2, b2 = params["linear2"]
    readout_g = jnp.mean(hg[:n_orig_gnode, :D], axis=0) @ W2 + b2   # (D,)

    if skeleton_edges:
        # NOTE: intentionally mirrors torch's `.reshape((2, -1))` (row-major
        # reshape, not a transpose) to keep the original semantics.
        sk = jnp.asarray(skeleton_edges, jnp.int32).reshape(2, -1)
    else:
        sk = jnp.zeros((2, 0), jnp.int32)
    agg_in = jnp.concatenate([readout_q, overlap_feature], axis=-1)  # (n_sub, 2D)
    overlap_feature = gin_forward(params["aggregate"], agg_in, sk)[:, :D]

    # ---- tiny scalar tail: plain jnp, fused by XLA (no Pallas launches) ----
    hskeleton = jnp.concatenate([readout_q, overlap_feature], axis=-1)
    Ww, bw = params["weighter"]
    weight_input = jax.nn.softmax(hskeleton @ Ww + bw, axis=-2)
    hskeleton = readout_q * weight_input
    readout_q_mean = jnp.mean(hskeleton, axis=-2)                    # (D,)

    norm_flat = jnp.linalg.norm(hskeleton, axis=-1)
    # original torch gates the WHOLE vector on `torch.any(nskeleton == 0)`
    pjlength = jnp.where(
        jnp.any(norm_flat == 0),
        jnp.zeros_like(norm_flat),
        jnp.sum(hskeleton * readout_g.reshape(1, -1), axis=-1)
        / jnp.where(norm_flat == 0, 1.0, norm_flat))

    Wa2, ba2 = params["aggregate2"]
    cat_rq_rg = jnp.concatenate([readout_q_mean, readout_g], axis=-1)  # (2D,)
    readout = jnp_swish(cat_rq_rg) @ Wa2 + ba2                         # (D,)

    Ww2, bw2 = params["weighter2"]
    out_in = jnp.concatenate([readout, jnp.asarray([float(Ng)], F32)], axis=-1)
    out = out_in @ Ww2 + bw2                                           # (1,)
    out1 = nonlinear_func(out, max_card, min_card)

    return out1, (x1s, x2s, ys), pjlength


# ----------------------------------------------------------------------------
if __name__ == "__main__":
    key = jax.random.PRNGKey(0)
    k_params, k_xg, k_xq = jax.random.split(key, 3)

    input_size, model_size, nlayer = 16, 32, 1
    n_gnode, n_orig_gnode = 12, 10
    n_qnode, n_orig_qnode = 6, 5

    params = init_learnsc_params(k_params, input_size, model_size, nlayer)

    xg = jax.random.normal(k_xg, (n_gnode, input_size), F32)
    xq = jax.random.normal(k_xq, (n_qnode, input_size), F32)
    eg = jnp.asarray([[0, 1, 2, 3, 4, 5, 6, 7, 8, 9, 10, 11, 1, 2, 3, 4],
                      [1, 2, 3, 4, 5, 6, 7, 8, 9, 10, 11, 0, 0, 1, 2, 3]],
                     jnp.int32)
    eq = jnp.asarray([[0, 1, 2, 3, 4, 5, 1, 2],
                      [1, 2, 3, 4, 5, 0, 0, 1]], jnp.int32)

    match = {0: 0, 1: 1, 7: 0}                  # graph node -> query node
    subqueries = [[0, 1, 2], [1, 2, 3], [3, 4]]
    overlap = {(0, 1): [1, 2], (1, 0): [1, 2], (1, 2): [3]}
    # interaction-graph edges: row 0 = query index (0..nq-1),
    # row 1 = graph index shifted by nq (nq..nq+ng-1)
    itedge = jnp.asarray(
        [[0, 0, 1, 1, 2, 2, 3, 3, 4, 4, 0, 1, 2, 3, 4],
         [5, 6, 6, 7, 7, 8, 8, 9, 9, 10, 11, 12, 13, 14, 5]], jnp.int32)
    npairs = [(0, 9), (1, 10), (2, 12), (4, 7)]

    out1, (x1s, x2s, ys), pjlength = learnsc_forward(
        params, xg, eg, n_orig_gnode, match, xq, eq, n_orig_qnode,
        overlap, subqueries, itedge, npairs)

    jax.block_until_ready((out1, x1s, x2s, ys, pjlength))
    print("KERNEL_OK")
</pallas_src>

<mosaic_0001>
module attributes {stable_mosaic.version = 11 : i64} {
  func.func @_gin_layer_kernel(%arg0: i32, %arg1: memref<12x12xf32, #tpu.memory_space<vmem>>, %arg2: memref<12x16xf32, #tpu.memory_space<vmem>>, %arg3: memref<12x16xf32, #tpu.memory_space<vmem>>, %arg4: memref<16x128xf32, #tpu.memory_space<vmem>>, %arg5: memref<1x128xf32, #tpu.memory_space<vmem>>, %arg6: memref<12x128xf32, #tpu.memory_space<vmem>>) attributes {dimension_semantics = [#tpu.dimension_semantics<parallel>], iteration_bounds = array<i64: 1>, scalar_prefetch = 0 : i64, scratch_operands = 0 : i64, tpu.core_type = #tpu.core_type<tc>, window_params = [{transform_indices = @transform_0, window_bounds = array<i64: 12, 12>}, {pipeline_mode = #tpu.pipeline_mode<synchronous>, transform_indices = @transform_1, window_bounds = array<i64: 12, 16>}, {transform_indices = @transform_2, window_bounds = array<i64: 12, 16>}, {pipeline_mode = #tpu.pipeline_mode<synchronous>, transform_indices = @transform_3, window_bounds = array<i64: 16, 128>}, {pipeline_mode = #tpu.pipeline_mode<synchronous>, transform_indices = @transform_4, window_bounds = array<i64: 1, 128>}, {transform_indices = @transform_5, window_bounds = array<i64: 12, 128>}]} {
    %c0 = arith.constant 0 : index
    %c0_0 = arith.constant 0 : index
    %0 = vector.load %arg1[%c0, %c0_0] : memref<12x12xf32, #tpu.memory_space<vmem>>, vector<12x12xf32>
    %1 = arith.truncf %0 : vector<12x12xf32> to vector<12x12xbf16>
    %c0_1 = arith.constant 0 : index
    %c0_2 = arith.constant 0 : index
    %2 = vector.load %arg2[%c0_1, %c0_2] : memref<12x16xf32, #tpu.memory_space<vmem>>, vector<12x16xf32>
    %3 = arith.truncf %2 : vector<12x16xf32> to vector<12x16xbf16>
    %cst = arith.constant dense<0.000000e+00> : vector<12x16xf32>
    %4 = tpu.matmul %1, %3, %cst {dimension_numbers = #tpu.dot_dimension_numbers<[1], [0], [0], [1], [0, 0, 1, 1], [], []>} : vector<12x12xbf16>, vector<12x16xbf16>, vector<12x16xf32> -> vector<12x16xf32>
    %c0_3 = arith.constant 0 : index
    %c0_4 = arith.constant 0 : index
    %5 = vector.load %arg3[%c0_3, %c0_4] : memref<12x16xf32, #tpu.memory_space<vmem>>, vector<12x16xf32>
    %6 = arith.addf %5, %4 : vector<12x16xf32>
    %7 = arith.truncf %6 : vector<12x16xf32> to vector<12x16xbf16>
    %c0_5 = arith.constant 0 : index
    %c0_6 = arith.constant 0 : index
    %8 = vector.load %arg4[%c0_5, %c0_6] : memref<16x128xf32, #tpu.memory_space<vmem>>, vector<16x128xf32>
    %9 = arith.truncf %8 : vector<16x128xf32> to vector<16x128xbf16>
    %cst_7 = arith.constant dense<0.000000e+00> : vector<12x128xf32>
    %10 = tpu.matmul %7, %9, %cst_7 {dimension_numbers = #tpu.dot_dimension_numbers<[1], [0], [0], [1], [0, 0, 1, 1], [], []>} : vector<12x16xbf16>, vector<16x128xbf16>, vector<12x128xf32> -> vector<12x128xf32>
    %c0_8 = arith.constant 0 : index
    %c0_9 = arith.constant 0 : index
    %11 = vector.load %arg5[%c0_8, %c0_9] : memref<1x128xf32, #tpu.memory_space<vmem>>, vector<1x128xf32>
    %12 = vector.broadcast %11 : vector<1x128xf32> to vector<12x128xf32>
    %13 = arith.addf %10, %12 : vector<12x128xf32>
    %14 = arith.negf %13 : vector<12x128xf32>
    %15 = math.exp %14 : vector<12x128xf32>
    %cst_10 = arith.constant 1.000000e+00 : f32
    %16 = vector.broadcast %cst_10 : f32 to vector<12x128xf32>
    %17 = arith.addf %16, %15 : vector<12x128xf32>
    %18 = arith.divf %16, %17 : vector<12x128xf32>
    %19 = arith.mulf %13, %18 : vector<12x128xf32>
    %c0_11 = arith.constant 0 : index
    %c0_12 = arith.constant 0 : index
    %20 = vector.load %arg6[%c0_11, %c0_12] : memref<12x128xf32, #tpu.memory_space<vmem>>, vector<12x128xf32>
    tpu.vector_store %arg6[%c0_11, %c0_12], %19 {strides = array<i32>} : memref<12x128xf32, #tpu.memory_space<vmem>>, vector<12x128xf32>,
    return
  }
  func.func @transform_0(%arg0: i32) -> (i32, i32) {
    %c0_i32 = arith.constant 0 : i32
    %c0_i32_0 = arith.constant 0 : i32
    return %arg0, %c0_i32 : i32, i32
  }
  func.func @transform_1(%arg0: i32) -> (i32, i32) {
    %c0_i32 = arith.constant 0 : i32
    %c0_i32_0 = arith.constant 0 : i32
    %c0_i32_1 = arith.constant 0 : i32
    return %c0_i32, %c0_i32_0 : i32, i32
  }
  func.func @transform_2(%arg0: i32) -> (i32, i32) {
    %c0_i32 = arith.constant 0 : i32
    %c0_i32_0 = arith.constant 0 : i32
    return %arg0, %c0_i32 : i32, i32
  }
  func.func @transform_3(%arg0: i32) -> (i32, i32) {
    %c0_i32 = arith.constant 0 : i32
    %c0_i32_0 = arith.constant 0 : i32
    %c0_i32_1 = arith.constant 0 : i32
    return %c0_i32, %c0_i32_0 : i32, i32
  }
  func.func @transform_4(%arg0: i32) -> (i32, i32) {
    %c0_i32 = arith.constant 0 : i32
    %c0_i32_0 = arith.constant 0 : i32
    %c0_i32_1 = arith.constant 0 : i32
    return %c0_i32, %c0_i32_0 : i32, i32
  }
  func.func @transform_5(%arg0: i32) -> (i32, i32) {
    %c0_i32 = arith.constant 0 : i32
    %c0_i32_0 = arith.constant 0 : i32
    return %arg0, %c0_i32 : i32, i32
  }
}

</mosaic_0001>

<bundles_post_ra>
// kernel: tpu_custom_call.1
= control target key start
LH: loop header
LB: loop body
LE: loop exit
PB: predicated region body
PF: predicated region fallthrough
CT: control target
= control target key end

     0   :  { %10 = vsyncpa [#allocation3], 0  ;;  %s445_s0 = inlined_call_operand.hbm [shape: f32[12,12], index: 0, kind: input, shape index: {}]   ;;  %s446_s1 = inlined_call_operand.hbm [shape: f32[12,16], index: 1, kind: input, shape index: {}]   ;;  %s447_s2 = inlined_call_operand.hbm [shape: f32[12,16], index: 2, kind: input, shape index: {}]   ;;  %s448_s3 = inlined_call_operand.hbm [shape: f32[16,128], index: 3, kind: input, shape index: {}]   ;;  %s449_s4 = inlined_call_operand.vmem [shape: f32[1,128], index: 4, kind: input, shape index: {}]   ;;  %s450_s5 = inlined_call_operand.hbm [shape: f32[12,128], index: 5, kind: output, shape index: {}]  }
   0x1   :  { %11 = vsyncpa [#allocation6], 0 }
   0x2   :  { %12 = vsyncpa [#allocation9], 0 }
   0x3   :  { %13 = vsyncpa [#allocation4], 0  ;;  %s373_s18 = smov [#allocation5]   ;;  %s374_s20 = smov [#allocation2]  }
   0x4   :  { %s31_s19 = sshll.u32 %s373_s18, 4  ;;  %s19_s21 = sshll.u32 %s374_s20, 4  ;;  %s32_s19 = int_to_ptr.vmem [resolvable:$true] %s31_s19  ;;  %s20_s21 = int_to_ptr.vmem [resolvable:$true] %s19_s21 }
   0x5   :  { %s273_s22 = scalar_lea.vmem %s32_s19, 256  ;;  %p278_p1 = scmp.lt.s32.totalorder %s32_s19, %s32_s19 }
   0x6   :  { %p274_p0 = scmp.ne.s32.totalorder %s32_s19, %s273_s22  ;;  %p279_p2 = scmp.lt.s32.totalorder %s273_s22, %s273_s22 }
   0x8   :  { %p280_p3 = por %p279_p2, %p278_p1 }
   0xa   :  { %p281_p4 = pnand %p280_p3, %p274_p0 }
   0xc   :  { %284 = shalt.err (!%p281_p4)
}
   0xd   :  { %s375_s23 = smov 128   ;;  %s376_s24 = smov 8  }
   0xe   :  { %37 = dma.hbm_to_vmem [thread:$0]  %s446_s1, 256, %s32_s19, [#allocation6], %s375_s23, %s375_s23, %s376_s24  }
   0xf   :  { %s293_s27 = scalar_lea.vmem %s20_s21, 256  ;;  %p298_p6 = scmp.lt.s32.totalorder %s20_s21, %s20_s21 }
  0x10   :  { %p294_p5 = scmp.ne.s32.totalorder %s20_s21, %s293_s27  ;;  %p299_p7 = scmp.lt.s32.totalorder %s293_s27, %s293_s27 }
  0x12   :  { %p300_p8 = por %p299_p7, %p298_p6 }
  0x14   :  { %p301_p9 = pnand %p300_p8, %p294_p5 }
  0x16   :  { %304 = shalt.err (!%p301_p9)
}
  0x17   :  { %25 = dma.hbm_to_vmem [thread:$0]  %s445_s0, 256, %s20_s21, [#allocation3], %s375_s23, %s375_s23, %s376_s24  }
  0x18   :  { %s377_s30 = smov [#allocation7]   ;;  %s378_s7 = smov [#allocation8]  }
  0x19   :  { %s43_s6 = sshll.u32 %s377_s30, 4  ;;  %s55_s8 = sshll.u32 %s378_s7, 4  ;;  %s44_s6 = int_to_ptr.vmem [resolvable:$true] %s43_s6  ;;  %s56_s8 = int_to_ptr.vmem [resolvable:$true] %s55_s8 }
  0x1a   :  { %s313_s1 = scalar_lea.vmem %s44_s6, 256  ;;  %p318_p11 = scmp.lt.s32.totalorder %s44_s6, %s44_s6 }
  0x1b   :  { %p314_p10 = scmp.ne.s32.totalorder %s44_s6, %s313_s1  ;;  %p319_p12 = scmp.lt.s32.totalorder %s313_s1, %s313_s1 }
  0x1d   :  { %p320_p13 = por %p319_p12, %p318_p11 }
  0x1f   :  { %p321_p0 = pnand %p320_p13, %p314_p10 }
  0x21   :  { %324 = shalt.err (!%p321_p0)
}
  0x22   :  { %49 = dma.hbm_to_vmem [thread:$0]  %s447_s2, 256, %s44_s6, [#allocation6], %s375_s23, %s375_s23, %s376_s24  }
  0x23   :  { %s333_s0 = scalar_lea.vmem %s56_s8, 256  ;;  %p338_p2 = scmp.lt.s32.totalorder %s56_s8, %s56_s8 }
  0x24   :  { %p334_p1 = scmp.ne.s32.totalorder %s56_s8, %s333_s0  ;;  %p339_p3 = scmp.lt.s32.totalorder %s333_s0, %s333_s0 }
  0x26   :  { %p340_p4 = por %p339_p3, %p338_p2 }
  0x28   :  { %p341_p5 = pnand %p340_p4, %p334_p1 }
  0x2a   :  { %344 = shalt.err (!%p341_p5)
}
  0x2b   :  { %61 = dma.hbm_to_vmem [thread:$0]  %s448_s3, 256, %s56_s8, [#allocation9], %s375_s23, %s375_s23, %s376_s24  }
  0x2c   :  { %365 = dma.done.wait [#allocation3], 256  }
  0x2d   :  { %366 = vsyncadd [#allocation3], 4294967040 }
  0x2e   :  { %367 = dma.done.wait [#allocation6], 512  }
  0x2f   :  { %368 = vsyncadd [#allocation6], 4294966784 }
  0x30   :  { %369 = dma.done.wait [#allocation9], 256  }
  0x31   :  { %370 = vsyncadd [#allocation9], 4294967040  ;;  %v379_v0 = vmov 0.0   ;;  %vm380_vm0 = vmmov 0   ;;  %v80_v1 = vld [vmem:[#allocation5] sm:$0xff]  ;;  %vm87_vm1 = vcmask 1045504  }
  0x32   :  { %236 = vmatprep.subr.bf16.mxu0 %v379_v0  ;;  %238 = vmatprep.mubr.msk.bf16.mxu0 %vm380_vm0, %v379_v0  ;;  %v81_v2 = vld [vmem:[#allocation5 + $0x8] sm:$0xf]  ;;  %v77_v3 = vld [vmem:[#allocation2] sm:$0xff]  ;;  %v78_v5 = vld [vmem:[#allocation2 + $0x8] sm:$0xf]  ;;  %vm83_vm2 = vcmask 97280  }
  0x33   :  { %242 = vmatprep.subr.bf16.mxu1 %v379_v0  ;;  %244 = vmatprep.mubr.msk.bf16.mxu1 %vm380_vm0, %v379_v0  ;;  %v82_v4 = vpack.c.bf16 %v81_v2, %v80_v1  ;;  %v79_v7 = vpack.c.bf16 %v78_v5, %v77_v3  ;;  %v137_v8 = vld [vmem:[#allocation8] sm:$0xff]  ;;  %v138_v9 = vld [vmem:[#allocation8 + $0x8] sm:$0xff]  ;;  %v132_v12 = vld [vmem:[#allocation7] sm:$0xff]  ;;  %vm147_vm3 = vcmask 130048   ;;  %s381_s13 = smov [#allocation10]  }
  0x34   :  { %v139_v10 = vpack.c.bf16 %v138_v9, %v137_v8  ;;  %v133_v14 = vld [vmem:[#allocation7 + $0x8] sm:$0xf]  ;;  %v228_v20 = vld [vmem:[%s449_s4] ss:$0 sm:$0xff]  ;;  %s213_s4 = sshll.u32 %s381_s13, 4  ;;  %s214_s4 = int_to_ptr.vmem [resolvable:$true] %s213_s4 }
  0x35   :  { %v89_v6 = vsel %vm87_vm1, %v82_v4, 0  ;;  %s345_s14 = scalar_lea.vmem %s214_s4, 256  ;;  %p350_p7 = scmp.lt.s32.totalorder %s214_s4, %s214_s4 }
  0x36   :  { %237 = vmatpush3.bf16.msra.mxu0 %v89_v6  ;;  %243 = vmatpush3.bf16.msra.mxu1 %v139_v10  ;;  %p346_p6 = scmp.ne.s32.totalorder %s214_s4, %s345_s14  ;;  %p351_p8 = scmp.lt.s32.totalorder %s345_s14, %s345_s14 }
  0x38   :  { %p352_p9 = por %p351_p8, %p350_p7 }
  0x39   :  { %239 = vmatmul.mubr.msk.bf16.vlgmr.msra.gmra.mxu0 %vm83_vm2, %v79_v7 }
  0x3a   :  { %p353_p10 = pnand %p352_p9, %p346_p6 }
  0xf9   :  { %v125_v11 = vpop.f32.mrf.mxu0 }
  0xfa   :  { %v134_v16 = vadd.f32 %v132_v12, %v125_v11 }
  0xfb   :  { %v240_v13 = vpop.f32.mrf.mxu0 }
  0xfd   :  { %v128_v15 = vpop.f32.mrf.mxu0 }
  0xfe   :  { %v135_v17 = vadd.f32 %v133_v14, %v128_v15 }
  0xff   :  { %v241_v18 = vpop.f32.mrf.mxu0 }
 0x100   :  { %v136_v19 = vpack.c.bf16 %v135_v17, %v134_v16 }
 0x102   :  { %245 = vmatmul.mubr.msk.bf16.vlgmr.msra.gmra.mxu1 %vm147_vm3, %v136_v19 }
 0x1c2   :  { %v185_v21 = vpop.f32.mrf.mxu1 }
 0x1c3   :  { %v186_v22 = vadd.f32 %v228_v20, %v185_v21 }
 0x1c4   :  { %v246_v23 = vpop.f32.mrf.mxu1 }
 0x1c5   :  { %v230_v24 = vmul.f32 -1.442695, %v186_v22 }
 0x1c6   :  { %v188_v25 = vpop.f32.mrf.mxu1 }
 0x1c7   :  { %257 = vpow2.f32 %v230_v24  ;;  %v189_v26 = vadd.f32 %v228_v20, %v188_v25 }
 0x1c8   :  { %v247_v27 = vpop.f32.mrf.mxu1 }
 0x1c9   :  { %v231_v28 = vmul.f32 -1.442695, %v189_v26 }
 0x1cb   :  { %259 = vpow2.f32 %v231_v28 }
 0x1d4   :  { %v258_v29 = vpop.eup %257 }
 0x1d5   :  { %v198_v30 = vadd.f32 1.0, %v258_v29 }
 0x1d7   :  { %261 = vrcp.f32 %v198_v30 }
 0x1d8   :  { %v260_v31 = vpop.eup %259 }
 0x1d9   :  { %v199_v32 = vadd.f32 1.0, %v260_v31 }
 0x1db   :  { %263 = vrcp.f32 %v199_v32 }
 0x1e4   :  { %v262_v33 = vpop.eup %261 }
 0x1e5   :  { %v204_v34 = vmul.f32 %v262_v33, %v186_v22 }
 0x1e7   :  { %206 = vst [vmem:[#allocation10] sm:$0xff] %v204_v34 }
 0x1e8   :  { %v264_v35 = vpop.eup %263 }
 0x1e9   :  { %v205_v36 = vmul.f32 %v264_v35, %v189_v26 }
 0x1eb   :  { %207 = vst [vmem:[#allocation10 + $0x8] sm:$0xf] %v205_v36 }
 0x1ec   :  { %356 = shalt.err (!%p353_p10)
}
 0x1ed   :  { %219 = dma.vmem_to_hbm [thread:$0]  %s214_s4, 256, %s450_s5, [#allocation4], %s375_s23, %s375_s23, %s376_s24  }
 0x1ee   :  { %371 = dma.done.wait [#allocation4], 256  }
 0x1ef   :  { %372 = vsyncadd [#allocation4], 4294967040 }
 0x1f0   :  { %223 = vsyncpa [#allocation3], 1 }
 0x1f1   :  { %224 = vsyncpa [#allocation6], 1 }
 0x1f2   :  { %225 = vsyncpa [#allocation9], 1 }
 0x1f3   :  { %226 = vsyncpa [#allocation4], 1 }

</bundles_post_ra>
